<compile_context>
chip_gen: v6e
topology: v6e:2x2x1
jax: 0.10.0
libtpu: 0.0.40
codegen_flags: <defaults>
</compile_context>

<pallas_src>
import jax
import jax.numpy as jnp
from jax import lax
from jax.experimental import pallas as pl
from jax.experimental.pallas import tpu as pltpu


def _choose_tile(n, cap):
    """Largest tile <= cap that divides n and is a multiple of 128 (else full n)."""
    for t in (1024, 512, 256, 128):
        if t <= cap and n % t == 0:
            return t
    # TODO(synk): for N not a multiple of 128, pad N in the wrapper and mask the
    # softmax instead of falling back to a full-N block (VMEM risk for large N).
    return n


# ---------------------------------------------------------------------------
# Kernel 1: fused 1x1-conv projections (q|k|v in a single MXU matmul),
#           channels-first, lane-dense over the spatial axis.
# ---------------------------------------------------------------------------
def _proj_kernel(x_ref,                   # (1, C, tn)        f32
                 w_ref, b_ref,            # (C, 2*C8p + C) bf16, (2*C8p + C, 1) f32
                 q_ref, k_ref, v_ref):    # (1, C8p, tn) / (1, C8p, tn) / (1, C, tn) bf16
    c8 = q_ref.shape[1]
    x_bf16 = x_ref[0].astype(jnp.bfloat16)                        # (C, tn)

    # y[o, n] = sum_c w[c, o] * x[c, n]  for o in [q | k | v] channels
    y = lax.dot_general(w_ref[...], x_bf16,
                        (((0,), (0,)), ((), ())),
                        preferred_element_type=jnp.float32)       # (2*C8p + C, tn) f32
    y = y + b_ref[...]
    q_ref[0] = y[:c8, :].astype(jnp.bfloat16)
    k_ref[0] = y[c8:2 * c8, :].astype(jnp.bfloat16)
    v_ref[0] = y[2 * c8:, :].astype(jnp.bfloat16)


# ---------------------------------------------------------------------------
# Kernel 2: tiled attention, two sweeps over the key axis.
#   pass 0: online (rescaled) row max / row sum over key tiles.
#   pass 1: exact normalized attention tile -> HBM, accumulate out, finalize.
# ---------------------------------------------------------------------------
def _flash_attn_kernel(gamma_ref,                      # SMEM (1,)
                       q_ref,                          # (1, C8p, tq) bf16
                       k_ref,                          # (1, C8p, tk) bf16
                       v_ref,                          # (1, C,   tk) bf16
                       x_ref,                          # (1, C,   tq) f32 (residual)
                       out_ref,                        # (1, C,   tq) f32
                       attn_ref,                       # (1, tq,  tk) attn_dtype
                       m_scr, l_scr, acc_scr):         # (tq,1), (tq,1), (C,tq) f32
    pass_idx = pl.program_id(2)        # 0 = stats sweep, 1 = emit sweep
    ki = pl.program_id(3)
    nk = pl.num_programs(3)

    # energy tile: s[n, m] = sum_d q[d, n] * k[d, m]   (no materialized transpose)
    s = lax.dot_general(q_ref[0], k_ref[0],
                        (((0,), (0,)), ((), ())),
                        preferred_element_type=jnp.float32)       # (tq, tk) f32

    @pl.when((pass_idx == 0) & (ki == 0))
    def _init():
        m_scr[...] = jnp.full_like(m_scr, -jnp.inf)
        l_scr[...] = jnp.zeros_like(l_scr)
        acc_scr[...] = jnp.zeros_like(acc_scr)

    @pl.when(pass_idx == 0)
    def _stats():
        m_prev = m_scr[...]
        m_new = jnp.maximum(m_prev, jnp.max(s, axis=-1, keepdims=True))
        l_scr[...] = (l_scr[...] * jnp.exp(m_prev - m_new)
                      + jnp.sum(jnp.exp(s - m_new), axis=-1, keepdims=True))
        m_scr[...] = m_new

    @pl.when(pass_idx == 1)
    def _emit():
        # Exact reciprocal: the returned softmax rows must sum to 1 (review
        # correctness concern about approx=True leaking into the output).
        inv_l = pl.reciprocal(l_scr[...], approx=False)           # (tq, 1)
        p = jnp.exp(s - m_scr[...]) * inv_l                       # exact softmax tile, f32
        attn_ref[0] = p.astype(attn_ref.dtype)                    # bf16 write by default
        # acc[c, n] += sum_m v[c, m] * p[n, m]   (== v @ attn^T)
        acc_scr[...] += lax.dot_general(v_ref[0], p.astype(jnp.bfloat16),
                                        (((1,), (1,)), ((), ())),
                                        preferred_element_type=jnp.float32)

        @pl.when(ki == nk - 1)
        def _finalize():
            out_ref[0] = gamma_ref[0] * acc_scr[...] + x_ref[0]


# ---------------------------------------------------------------------------
# Wrapper
# ---------------------------------------------------------------------------
def self_attn_forward(x_nchw, params, *, q_tile=1024, k_tile=1024, proj_tile=1024,
                      attn_dtype=jnp.bfloat16):
    """x_nchw: (B, C, W, H) f32.

    Returns (out (B,C,W,H) f32, attention (B,N,N) attn_dtype).
    Note: q/k/v are bf16 MXU operands and the attention matrix is returned in
    bf16 by default (halves the dominant (B,N,N) HBM writeback); pass
    attn_dtype=jnp.float32 if exact-f32 attention is required downstream.
    """
    B, C, W, H = x_nchw.shape
    N = W * H
    C8 = params["wq"].shape[1]

    # Channels-first, spatial-last: pure reshape of NCHW (no HBM transpose pass).
    x_cn = x_nchw.reshape(B, C, N)

    # Pad the q/k channel dim up to a multiple of 8 and at least 16 so bf16
    # (16,128) sublane tiles are full (zero channels contribute 0 to energy).
    C8p = max(16, ((C8 + 7) // 8) * 8)
    pad = C8p - C8
    wq = jnp.pad(params["wq"], ((0, 0), (0, pad)))
    wk = jnp.pad(params["wk"], ((0, 0), (0, pad)))
    bq = jnp.pad(params["bq"], (0, pad))
    bk = jnp.pad(params["bk"], (0, pad))

    # Fully fused projection weights [q | k | v]: one MXU pass over x, one
    # bias/cast epilogue. Weights cast once to bf16 in the wrapper, biases f32.
    wqkv = jnp.concatenate([wq, wk, params["wv"]], axis=1).astype(jnp.bfloat16)
    bqkv = jnp.concatenate([bq, bk, params["bv"]], axis=0).reshape(2 * C8p + C, 1)
    bqkv = bqkv.astype(jnp.float32)
    gamma = params["gamma"].reshape(1).astype(jnp.float32)

    # ---- projections (hoisted: computed once, not once per key tile) ----
    tn = _choose_tile(N, proj_tile)
    q, k, v = pl.pallas_call(
        _proj_kernel,
        out_shape=(
            jax.ShapeDtypeStruct((B, C8p, N), jnp.bfloat16),
            jax.ShapeDtypeStruct((B, C8p, N), jnp.bfloat16),
            jax.ShapeDtypeStruct((B, C, N), jnp.bfloat16),
        ),
        grid_spec=pltpu.PrefetchScalarGridSpec(
            num_scalar_prefetch=0,
            grid=(B, N // tn),
            in_specs=[
                pl.BlockSpec((1, C, tn), lambda b, j: (b, 0, j)),          # x
                pl.BlockSpec((C, 2 * C8p + C), lambda b, j: (0, 0)),       # wqkv
                pl.BlockSpec((2 * C8p + C, 1), lambda b, j: (0, 0)),       # bqkv
            ],
            out_specs=[
                pl.BlockSpec((1, C8p, tn), lambda b, j: (b, 0, j)),        # q
                pl.BlockSpec((1, C8p, tn), lambda b, j: (b, 0, j)),        # k
                pl.BlockSpec((1, C, tn), lambda b, j: (b, 0, j)),          # v
            ],
        ),
        compiler_params=pltpu.CompilerParams(
            dimension_semantics=("parallel", "parallel"),
            vmem_limit_bytes=32 * 1024 * 1024),   # explicit: v5e scoped default is 16 MiB
    )(x_cn, wqkv, bqkv)

    # ---- tiled attention ----
    tq = _choose_tile(N, q_tile)
    tk = _choose_tile(N, k_tile)
    nq, nk = N // tq, N // tk

    out_cn, attn = pl.pallas_call(
        _flash_attn_kernel,
        out_shape=(
            jax.ShapeDtypeStruct((B, C, N), jnp.float32),
            jax.ShapeDtypeStruct((B, N, N), attn_dtype),
        ),
        grid_spec=pltpu.PrefetchScalarGridSpec(
            num_scalar_prefetch=0,
            grid=(B, nq, 2, nk),               # (batch, q tile, pass, k tile)
            in_specs=[
                pl.BlockSpec(memory_space=pltpu.SMEM),                             # gamma
                pl.BlockSpec((1, C8p, tq), lambda b, qi, p, ki: (b, 0, qi)),       # q
                pl.BlockSpec((1, C8p, tk), lambda b, qi, p, ki: (b, 0, ki)),       # k
                pl.BlockSpec((1, C, tk), lambda b, qi, p, ki: (b, 0, ki * p)),     # v (streamed in pass 1 only)
                pl.BlockSpec((1, C, tq), lambda b, qi, p, ki: (b, 0, qi)),         # x residual
            ],
            out_specs=[
                pl.BlockSpec((1, C, tq), lambda b, qi, p, ki: (b, 0, qi)),         # out (lane-dense over N)
                pl.BlockSpec((1, tq, tk), lambda b, qi, p, ki: (b, qi, ki * p)),   # attention tiles
            ],
            scratch_shapes=[
                pltpu.VMEM((tq, 1), jnp.float32),   # running row max
                pltpu.VMEM((tq, 1), jnp.float32),   # running row sum
                pltpu.VMEM((C, tq), jnp.float32),   # output accumulator
            ],
        ),
        compiler_params=pltpu.CompilerParams(
            dimension_semantics=("parallel", "parallel", "arbitrary", "arbitrary"),
            # ~20 MiB used at 1024x1024 tiles; 48 MiB limit is safe on every
            # generation (v7x physical VMEM is 64 MiB — do not raise past ~48).
            vmem_limit_bytes=48 * 1024 * 1024),
    )(gamma, q, k, v, x_cn)

    out = out_cn.reshape(B, C, W, H)
    return out, attn


def make_params(key, C):
    """Deterministic synthetic parameters matching Self_Attn(in_dim=C) shapes."""
    C8 = C // 8
    ks = jax.random.split(key, 6)
    scale = 0.1
    return {
        # Conv2d(C, Cout, 1) weight stored as (C_in, C_out) matmul weight
        "wq": scale * jax.random.normal(ks[0], (C, C8), jnp.float32),
        "bq": scale * jax.random.normal(ks[1], (C8,), jnp.float32),
        "wk": scale * jax.random.normal(ks[2], (C, C8), jnp.float32),
        "bk": scale * jax.random.normal(ks[3], (C8,), jnp.float32),
        "wv": scale * jax.random.normal(ks[4], (C, C), jnp.float32),
        "bv": scale * jax.random.normal(ks[5], (C,), jnp.float32),
        "gamma": jnp.zeros((1,), jnp.float32),   # nn.Parameter(torch.zeros(1))
    }


def _reference(x_nchw, params):
    """Pure-JAX reference mirroring the PyTorch forward."""
    B, C, W, H = x_nchw.shape
    N = W * H
    xf = x_nchw.reshape(B, C, N)
    q = jnp.einsum("bcn,cd->bdn", xf, params["wq"]) + params["bq"][None, :, None]
    k = jnp.einsum("bcn,cd->bdn", xf, params["wk"]) + params["bk"][None, :, None]
    v = jnp.einsum("bcn,cd->bdn", xf, params["wv"]) + params["bv"][None, :, None]
    energy = jnp.einsum("bdn,bdm->bnm", q, k)                    # (B, N, N)
    attn = jax.nn.softmax(energy, axis=-1)
    out = jnp.einsum("bcm,bnm->bcn", v, attn)                    # (B, C, N)
    out = params["gamma"][0] * out + xf
    return out.reshape(B, C, W, H), attn


if __name__ == "__main__":
    # N = 256 with 128-wide tiles -> 2x2 q/k tiles, exercising the two-pass
    # online-softmax accumulation path and the C8 -> 16 zero-padding (C//8 = 8).
    B, C, W, H = 2, 64, 16, 16
    key = jax.random.PRNGKey(0)
    kx, kp = jax.random.split(key)
    x = jax.random.normal(kx, (B, C, W, H), jnp.float32)
    params = make_params(kp, C)
    # The module initializes gamma to 0; use a nonzero value here so the
    # attention branch of `out` is actually exercised by the check below.
    params["gamma"] = jnp.full((1,), 0.5, jnp.float32)

    out, attn = jax.block_until_ready(
        self_attn_forward(x, params, q_tile=128, k_tile=128, proj_tile=128))

    out_ref, attn_ref = _reference(x, params)
    attn_f32 = attn.astype(jnp.float32)
    # bf16 MXU operands + bf16 attention writeback -> slightly looser tolerances.
    assert jnp.allclose(attn_f32, attn_ref, atol=5e-3, rtol=5e-2), \
        float(jnp.max(jnp.abs(attn_f32 - attn_ref)))
    assert jnp.allclose(out, out_ref, atol=2e-2, rtol=2e-2), \
        float(jnp.max(jnp.abs(out - out_ref)))

    print("KERNEL_OK")
</pallas_src>

<mosaic_0001>
module attributes {stable_mosaic.version = 11 : i64} {
  func.func @_proj_kernel(%arg0: i32, %arg1: i32, %arg2: memref<1x64x128xf32, #tpu.memory_space<vmem>>, %arg3: memref<64x96xbf16, #tpu.memory_space<vmem>>, %arg4: memref<96x1xf32, #tpu.memory_space<vmem>>, %arg5: memref<1x16x128xbf16, #tpu.memory_space<vmem>>, %arg6: memref<1x16x128xbf16, #tpu.memory_space<vmem>>, %arg7: memref<1x64x128xbf16, #tpu.memory_space<vmem>>) attributes {dimension_semantics = [#tpu.dimension_semantics<parallel>, #tpu.dimension_semantics<parallel>], iteration_bounds = array<i64: 2, 2>, scalar_prefetch = 0 : i64, scratch_operands = 0 : i64, tpu.core_type = #tpu.core_type<tc>, window_params = [{transform_indices = @transform_0, window_bounds = array<i64: 1, 64, 128>}, {pipeline_mode = #tpu.pipeline_mode<synchronous>, transform_indices = @transform_1, window_bounds = array<i64: 64, 96>}, {pipeline_mode = #tpu.pipeline_mode<synchronous>, transform_indices = @transform_2, window_bounds = array<i64: 96, 1>}, {transform_indices = @transform_3, window_bounds = array<i64: 1, 16, 128>}, {transform_indices = @transform_4, window_bounds = array<i64: 1, 16, 128>}, {transform_indices = @transform_5, window_bounds = array<i64: 1, 64, 128>}]} {
    %c0 = arith.constant 0 : index
    %c0_0 = arith.constant 0 : index
    %c0_1 = arith.constant 0 : index
    %0 = vector.load %arg2[%c0, %c0_0, %c0_1] : memref<1x64x128xf32, #tpu.memory_space<vmem>>, vector<1x64x128xf32>
    %1 = vector.shape_cast %0 : vector<1x64x128xf32> to vector<64x128xf32>
    %2 = arith.truncf %1 : vector<64x128xf32> to vector<64x128xbf16>
    %c0_2 = arith.constant 0 : index
    %c0_3 = arith.constant 0 : index
    %3 = vector.load %arg3[%c0_2, %c0_3] : memref<64x96xbf16, #tpu.memory_space<vmem>>, vector<64x96xbf16>
    %cst = arith.constant dense<0.000000e+00> : vector<96x128xf32>
    %4 = tpu.matmul %3, %2, %cst {dimension_numbers = #tpu.dot_dimension_numbers<[0], [0], [1], [1], [0, 1, 1, 1], [], []>} : vector<64x96xbf16>, vector<64x128xbf16>, vector<96x128xf32> -> vector<96x128xf32>
    %c0_4 = arith.constant 0 : index
    %c0_5 = arith.constant 0 : index
    %5 = vector.load %arg4[%c0_4, %c0_5] : memref<96x1xf32, #tpu.memory_space<vmem>>, vector<96x1xf32>
    %6 = vector.broadcast %5 : vector<96x1xf32> to vector<96x128xf32>
    %7 = arith.addf %4, %6 : vector<96x128xf32>
    %8 = vector.extract_strided_slice %7 {offsets = [0, 0], sizes = [16, 128], strides = [1, 1]} : vector<96x128xf32> to vector<16x128xf32>
    %9 = arith.truncf %8 : vector<16x128xf32> to vector<16x128xbf16>
    %c0_6 = arith.constant 0 : index
    %c0_7 = arith.constant 0 : index
    %c0_8 = arith.constant 0 : index
    %10 = vector.load %arg5[%c0_6, %c0_7, %c0_8] : memref<1x16x128xbf16, #tpu.memory_space<vmem>>, vector<1x16x128xbf16>
    %11 = vector.shape_cast %10 : vector<1x16x128xbf16> to vector<16x128xbf16>
    %12 = vector.shape_cast %9 : vector<16x128xbf16> to vector<1x16x128xbf16>
    tpu.vector_store %arg5[%c0_6, %c0_7, %c0_8], %12 {strides = array<i32>} : memref<1x16x128xbf16, #tpu.memory_space<vmem>>, vector<1x16x128xbf16>,
    %13 = vector.extract_strided_slice %7 {offsets = [16, 0], sizes = [16, 128], strides = [1, 1]} : vector<96x128xf32> to vector<16x128xf32>
    %14 = arith.truncf %13 : vector<16x128xf32> to vector<16x128xbf16>
    %c0_9 = arith.constant 0 : index
    %c0_10 = arith.constant 0 : index
    %c0_11 = arith.constant 0 : index
    %15 = vector.load %arg6[%c0_9, %c0_10, %c0_11] : memref<1x16x128xbf16, #tpu.memory_space<vmem>>, vector<1x16x128xbf16>
    %16 = vector.shape_cast %15 : vector<1x16x128xbf16> to vector<16x128xbf16>
    %17 = vector.shape_cast %14 : vector<16x128xbf16> to vector<1x16x128xbf16>
    tpu.vector_store %arg6[%c0_9, %c0_10, %c0_11], %17 {strides = array<i32>} : memref<1x16x128xbf16, #tpu.memory_space<vmem>>, vector<1x16x128xbf16>,
    %18 = vector.extract_strided_slice %7 {offsets = [32, 0], sizes = [64, 128], strides = [1, 1]} : vector<96x128xf32> to vector<64x128xf32>
    %19 = arith.truncf %18 : vector<64x128xf32> to vector<64x128xbf16>
    %c0_12 = arith.constant 0 : index
    %c0_13 = arith.constant 0 : index
    %c0_14 = arith.constant 0 : index
    %20 = vector.load %arg7[%c0_12, %c0_13, %c0_14] : memref<1x64x128xbf16, #tpu.memory_space<vmem>>, vector<1x64x128xbf16>
    %21 = vector.shape_cast %20 : vector<1x64x128xbf16> to vector<64x128xbf16>
    %22 = vector.shape_cast %19 : vector<64x128xbf16> to vector<1x64x128xbf16>
    tpu.vector_store %arg7[%c0_12, %c0_13, %c0_14], %22 {strides = array<i32>} : memref<1x64x128xbf16, #tpu.memory_space<vmem>>, vector<1x64x128xbf16>,
    return
  }
  func.func @transform_0(%arg0: i32, %arg1: i32) -> (i32, i32, i32) {
    %c0_i32 = arith.constant 0 : i32
    %c0_i32_0 = arith.constant 0 : i32
    return %arg0, %c0_i32, %arg1 : i32, i32, i32
  }
  func.func @transform_1(%arg0: i32, %arg1: i32) -> (i32, i32) {
    %c0_i32 = arith.constant 0 : i32
    %c0_i32_0 = arith.constant 0 : i32
    %c0_i32_1 = arith.constant 0 : i32
    return %c0_i32, %c0_i32_0 : i32, i32
  }
  func.func @transform_2(%arg0: i32, %arg1: i32) -> (i32, i32) {
    %c0_i32 = arith.constant 0 : i32
    %c0_i32_0 = arith.constant 0 : i32
    %c0_i32_1 = arith.constant 0 : i32
    return %c0_i32, %c0_i32_0 : i32, i32
  }
  func.func @transform_3(%arg0: i32, %arg1: i32) -> (i32, i32, i32) {
    %c0_i32 = arith.constant 0 : i32
    %c0_i32_0 = arith.constant 0 : i32
    return %arg0, %c0_i32, %arg1 : i32, i32, i32
  }
  func.func @transform_4(%arg0: i32, %arg1: i32) -> (i32, i32, i32) {
    %c0_i32 = arith.constant 0 : i32
    %c0_i32_0 = arith.constant 0 : i32
    return %arg0, %c0_i32, %arg1 : i32, i32, i32
  }
  func.func @transform_5(%arg0: i32, %arg1: i32) -> (i32, i32, i32) {
    %c0_i32 = arith.constant 0 : i32
    %c0_i32_0 = arith.constant 0 : i32
    return %arg0, %c0_i32, %arg1 : i32, i32, i32
  }
}

</mosaic_0001>

<bundles_post_ra>
// kernel: tpu_custom_call.1
= control target key start
LH: loop header
LB: loop body
LE: loop exit
PB: predicated region body
PF: predicated region fallthrough
CT: control target
= control target key end

     0   :  { %s1549_s0 = inlined_call_operand.hbm [shape: f32[2,64,256], index: 0, kind: input, shape index: {}]   ;;  %s1550_s1 = inlined_call_operand.vmem [shape: bf16[64,96], index: 1, kind: input, shape index: {}]   ;;  %s1551_s2 = inlined_call_operand.vmem [shape: f32[96,1], index: 2, kind: input, shape index: {}]   ;;  %s1552_s3 = inlined_call_operand.hbm [shape: bf16[2,16,256], index: 3, kind: output, shape index: {0}]   ;;  %s1553_s4 = inlined_call_operand.hbm [shape: bf16[2,16,256], index: 4, kind: output, shape index: {1}]   ;;  %s1554_s5 = inlined_call_operand.hbm [shape: bf16[2,64,256], index: 5, kind: output, shape index: {2}]  }
   0x1   :  { %1563 = sst [smem:[#allocation15_spill]] %s1552_s3 }
   0x2   :  { %1564 = sst [smem:[#allocation16_spill]] %s1554_s5 }
   0x3   :  { %11 = vsyncpa [#allocation3], 0 }
   0x4   :  { %13 = vsyncpa [#allocation3 + $0x1], 0 }
   0x5   :  { %14 = vsyncpa [#allocation4], 0 }
   0x6   :  { %16 = vsyncpa [#allocation4 + $0x1], 0 }
   0x7   :  { %17 = vsyncpa [#allocation7], 0 }
   0x8   :  { %19 = vsyncpa [#allocation7 + $0x1], 0  ;;  %s1239_s18 = smov 0   ;;  %s1241_s19 = smov 0  }
   0x9   :  { %s1243_s20 = smov 0   ;;  %s1245_s21 = smov 0  }
   0xa   :  { %s1247_s22 = smov 0   ;;  %s1249_s23 = smov 0  }
   0xb   :  { %s1251_s24 = smov 0   ;;  %s1253_s25 = smov 0  }
   0xc LB: > { %1565 = sst [smem:[#allocation12_spill]] %s1168_s18  ;;  %s1280_s26 = sadd.s32 4294967295, %s1196_s25   ;;  %s1196_s25 = sphi %s1253_s25, %s25_s25   ;;  %s1192_s24 = sphi %s1251_s24, %s1587_s24   ;;  %s1188_s23 = sphi %s1249_s23, %s1586_s23   ;;  %s1184_s22 = sphi %s1247_s22, %s1585_s22   ;;  %s1180_s21 = sphi %s1245_s21, %s1584_s21   ;;  %s1176_s20 = sphi %s1243_s20, %s1583_s20   ;;  %s1172_s19 = sphi %s1241_s19, %s1582_s19   ;;  %s1168_s18 = sphi %s1239_s18, %s1581_s18  }
   0xd   : > { %s1560_s27 = sadd.s32 4294967294, %s1196_s25   ;;  %s34_s28 = sadd.s32 1, %s1188_s23 }
   0xe   : > { %s37_s29 = sadd.s32 1, %s1192_s24  ;;  %p35_p0 = scmp.ge.s32.totalorder %s34_s28, 2 }
   0xf   : > { %s46_s30 = sadd.s32 1, %s1176_s20  ;;  %p53_p1 = scmp.ne.s32.totalorder %s1176_s20, %s1172_s19 }
  0x10   : > { %p54_p2 = scmp.eq.s32.totalorder %s1196_s25, 0  ;;  %s1589_s28 = smov (%p35_p0, %s34_s28), 0 }
  0x11   : > { %1566 = sst [smem:[#allocation13_spill]] %s1589_s28  ;;  %s1591_s29 = smov (!%p35_p0, %s37_s29), %s1192_s24 }
  0x12   : > { %s42_s6 = ssub.s32 %s1188_s23, %s1589_s28  ;;  %p1294_p3 = por %p54_p2, %p53_p1 }
  0x13   : > { %p39_p4 = scmp.ge.s32.totalorder %s1591_s29, 2  ;;  %p59_p5 = scmp.ne.s32.totalorder %s1172_s19, %s1168_s18 }
  0x14   : > { %p60_p6 = scmp.eq.s32.totalorder %s1280_s26, 0  ;;  %p127_p7 = scmp.eq.s32.totalorder %s1280_s26, 3 }
  0x15   : > { %s1593_s29 = smov (%p39_p4, %s1591_s29), 0  ;;  %p133_p10 = scmp.eq.s32.totalorder %s1560_s27, 3 }
  0x16   : > { %1568 = sst [smem:[#allocation14_spill]] %s1593_s29  ;;  %p1304_p8 = por %p60_p6, %p59_p5 }
  0x17   : > { %p1308_p9 = por %p127_p7, %p53_p1  ;;  %s41_s10 = ssub.s32 %s1192_s24, %s1593_s29 }
  0x18   : > { %s43_s11 = sor.u32 %s42_s6, %s41_s10  ;;  %p1316_p12 = por %p133_p10, %p59_p5 }
  0x19   : > { %p44_p11 = scmp.eq.s32.totalorder %s43_s11, 0  ;;  %p937_p13 = scmp.lt.s32.totalorder %s1196_s25, 4 }
  0x1a   : > { %s215_s13 = sand.u32 1, %s1176_s20   ;;  %s792_s16 = sshll.u32 %s1192_s24, 4 }
  0x1b   : > { %s1323_s14 = scalar_select %p44_p11, %s1176_s20, %s46_s30  }
  0x1c   : > { %s791_s15 = sshll.u32 %s215_s13, 6  ;;  %s224_s17 = sadd.s32 %s1188_s23, %s792_s16 }
  0x1d   : > { %s219_s28 = scalar_lea.vmem [#allocation2], %s791_s15  ;;  %s793_s5 = sshll.u32 %s224_s17, 7 }
  0x1e   : > { %s227_s18 = sshll.u32 %s219_s28, 4  ;;  %s226_s6 = scalar_lea.hbm %s1549_s0, %s793_s5  ;;  %s228_s18 = int_to_ptr.vmem [resolvable:$true] %s227_s18 }
  0x1f   : > { %p1332_p0 = pnand %p937_p13, %p1294_p3  ;;  %s216_s11 = scalar_lea.sflag [#allocation3], %s215_s13 }
  0x20   : > { %s1029_s30 = scalar_lea.vmem %s228_s18, 1024  ;;  %s1198_s28 = smov [#allocation2]  }
  0x21   : > { %p1018_p1 = pneg %p1332_p0  ;;  %p1030_p2 = scmp.ne.s32.totalorder %s228_s18, %s1029_s30 }
  0x22   : > { %s1034_s15 = sshll.u32 %s1198_s28, 4  ;;  %s1035_s15 = int_to_ptr.vmem [resolvable:$false] %s1034_s15 }
  0x23   : > { %p1032_p4 = pnand %p1030_p2, %p1018_p1  ;;  %s1036_s16 = scalar_lea.vmem %s1035_s15, 2048 }
  0x24   : > { %p1037_p6 = scmp.lt.s32.totalorder %s228_s18, %s1035_s15  ;;  %p1038_p7 = scmp.lt.s32.totalorder %s1036_s16, %s1029_s30 }
  0x25   : > { %p1033_p5 = pneg %p1032_p4 }
  0x26   : > { %p1039_p10 = por %p1038_p7, %p1037_p6 }
  0x28   : > { %p1040_p11 = pnand %p1039_p10, %p1033_p5 }
  0x2a   : > { %1043 = shalt.err (!%p1040_p11)
}
  0x2b   : > { %s1199_s3 = smov 256   ;;  %s1200_s5 = smov 128  }
  0x2c   : > { %s1201_s29 = smov 8   ;;  %p794_p3 = scmp.ge.s32.totalorder %s1196_s25, 1 }
  0x2d   : > { %926 = dma.hbm_to_vmem [thread:$0]  (!%p1332_p0), %s226_s6, 1024, %s228_s18, %s216_s11, %s1199_s3, %s1200_s5, %s1201_s29  }
  0x2e   : > { %p235_p13 = scmp.lt.s32.totalorder %s1196_s25, 5 }
  0x30   : > { %p236_p1 = pnand %p794_p3, %p235_p13 }
  0x31   : > { %s1343_s7 = sand.u32 (!%p236_p1), 1, %s1172_s19  }
  0x32   : > { %239 = sbr.rel (%p236_p1) target bundleno = 424 (0x1a8), region = 32  ;;  %s795_s13 = sshll.u32 (!%p236_p1), %s1343_s7, 6 }
  0x33   : > { %s242_s17 = scalar_lea.sflag (!%p236_p1), [#allocation3], %s1343_s7  ;;  %s245_s30 = scalar_lea.vmem (!%p236_p1), [#allocation2], %s795_s13 }
  0x37   : > { %1155 = dma.done.wait (%p1304_p8), %s242_s17, 1024  }
  0x38   : > { %1157 = vsyncadd (%p1304_p8), %s242_s17, 4294966272  ;;  %v1202_v0 = vmov 0   ;;  %v1012_v1 = vld [vmem:[%s1550_s1] sm:$0xff]   ;;  %v1013_v2 = vld [vmem:[%s1550_s1 + $0x8] sm:$0xff]   ;;  %vm415_vm0 = vcmask 523264   ;;  %s796_s28 = sshll.u32 %s1343_s7, 3 }
  0x39   : > { %1010 = vset.pattern.permute.xlu1 %v1202_v0  ;;  %399 = vxpose.xlu0.c.b16.start [1/4] (short) (narrow) %v1012_v1, 96  ;;  %v289_v3 = vld [vmem:[%s245_s30 + $0x30] sm:$0xff]  ;;  %v290_v4 = vld [vmem:[%s245_s30 + $0x38] sm:$0xff]  ;;  %v287_v5 = vld [vmem:[%s245_s30 + $0x20] sm:$0xff]  ;;  %s824_s8 = sshll.u32 %s1184_s22, 2  ;;  %s274_s15 = scalar_lea.vmem [#allocation6], %s796_s28 }
  0x3a   : > { %v294_v6 = vpack.c.bf16 %v290_v4, %v289_v3  ;;  %v288_v7 = vld [vmem:[%s245_s30 + $0x28] sm:$0xff]  ;;  %v1014_v8 = vld [vmem:[%s1550_s1 + $0x10] sm:$0xff]   ;;  %v286_v11 = vld [vmem:[%s245_s30 + $0x18] sm:$0xff]  ;;  %s617_s16 = sshll.u32 %s274_s15, 4  ;;  %s597_s3 = sadd.s32 %s1180_s21, %s824_s8  ;;  %s1409_s16 = int_to_ptr.vmem [resolvable:$true] %s617_s16 }
  0x3b   : > { %v293_v9 = vpack.c.bf16 %v288_v7, %v287_v5  ;;  %v285_v10 = vld [vmem:[%s245_s30 + $0x10] sm:$0xff]  ;;  %v1015_v14 = vld [vmem:[%s1550_s1 + $0x18] sm:$0xff]   ;;  %v283_v15 = vld [vmem:[%s245_s30] sm:$0xff]  ;;  %s580_s5 = sand.u32 1, %s1280_s26   ;;  %s825_s29 = sshll.u32 %s597_s3, 6 }
  0x3c   : > { %887 = vmatprep.subr.bf16.mxu0 %v294_v6  ;;  %907 = vmatprep.subr.bf16.mxu1 %v294_v6  ;;  %v305_v12 = vld [vmem:[%s1551_s2 + $0x10] sm:$0xff]  ;;  %v292_v13 = vpack.c.bf16 %v286_v11, %v285_v10  ;;  %v284_v16 = vld [vmem:[%s245_s30 + $0x8] sm:$0xff]  ;;  %v306_v17 = vld [vmem:[%s1551_s2 + $0x18] sm:$0xff]  ;;  %s1411_s13 = scalar_lea.vmem [#allocation5], %s796_s28  ;;  %s1417_s26 = scalar_lea.hbm %s1553_s4, %s825_s29 }
  0x3d   : > { %400 = vxpose.xlu0.c.b16.cont [2/4] (short) (narrow) %v1013_v2, 96  ;;  %888 = vmatpush3.bf16.msra.mxu0 %v294_v6  ;;  %v291_v18 = vpack.c.bf16 %v284_v16, %v283_v15  ;;  %v303_v19 = vld [vmem:[%s1551_s2] sm:$0xff]  ;;  %v304_v20 = vld [vmem:[%s1551_s2 + $0x8] sm:$0xff]  ;;  %v309_v22 = vld [vmem:[%s1551_s2 + $0x30] sm:$0xff]  ;;  %s600_s17 = sshll.u32 %s1411_s13, 4  ;;  %s1573_s11 = sld [smem:[#allocation15_spill]]  ;;  %s1421_s17 = int_to_ptr.vmem [resolvable:$true] %s600_s17 }
  0x3e   : > { %911 = vmatpush3.bf16.msra.mxu1 %v294_v6  ;;  %889 = vmatprep.subr.bf16.mxu0 %v293_v9  ;;  %v308_v21 = vld [vmem:[%s1551_s2 + $0x28] sm:$0xff]  ;;  %v307_v23 = vld [vmem:[%s1551_s2 + $0x20] sm:$0xff]  ;;  %v310_v24 = vld [vmem:[%s1551_s2 + $0x38] sm:$0xff]  ;;  %s1428_s8 = scalar_lea.sflag [#allocation7], %s580_s5  ;;  %s1044_s3 = scalar_lea.vmem %s1409_s16, 128 }
  0x3f   : > { %908 = vmatprep.subr.bf16.mxu1 %v293_v9  ;;  %327 = vperm.xlu1 %1010, %v305_v12   ;;  %v313_v25 = vld [vmem:[%s1551_s2 + $0x50] sm:$0xff]  ;;  %v311_v26 = vld [vmem:[%s1551_s2 + $0x40] sm:$0xff]  ;;  %v312_v27 = vld [vmem:[%s1551_s2 + $0x48] sm:$0xff]  ;;  %p1045_p8 = scmp.ne.s32.totalorder %s1409_s16, %s1044_s3  ;;  %s1203_s18 = smov [#allocation6]  }
  0x40   : > { %v314_v28 = vld [vmem:[%s1551_s2 + $0x58] sm:$0xff]  ;;  %s1048_s30 = sshll.u32 %s1203_s18, 4  ;;  %s1049_s30 = int_to_ptr.vmem [resolvable:$false] %s1048_s30 }
  0x41   : > { %401 = vxpose.xlu0.c.b16.cont [3/4] (short) (narrow) %v1014_v8, 96  ;;  %890 = vmatpush3.bf16.msra.mxu0 %v293_v9  ;;  %p1046_p0 = pnand %p1045_p8, %p1308_p9  ;;  %s1050_s27 = scalar_lea.vmem %s1049_s30, 256 }
  0x42   : > { %912 = vmatpush3.bf16.msra.mxu1 %v293_v9  ;;  %891 = vmatprep.subr.bf16.mxu0 %v292_v13  ;;  %p1051_p4 = scmp.lt.s32.totalorder %s1409_s16, %s1049_s30  ;;  %p1052_p5 = scmp.lt.s32.totalorder %s1050_s27, %s1044_s3 }
  0x43   : > { %909 = vmatprep.subr.bf16.mxu1 %v292_v13  ;;  %332 = vperm.xlu1 %1010, %v306_v17   ;;  %s1426_s28 = scalar_lea.hbm %s1573_s11, %s825_s29  ;;  %p1047_p2 = pneg %p1046_p0 }
  0x44   : > { %p1053_p6 = por %p1052_p5, %p1051_p4 }
  0x45   : > { %402 = vxpose.xlu0.c.b16.end [4/4] (short) (narrow) %v1015_v14, 96  ;;  %892 = vmatpush3.bf16.msra.mxu0 %v292_v13 }
  0x46   : > { %913 = vmatpush3.bf16.msra.mxu1 %v292_v13  ;;  %893 = vmatprep.subr.bf16.mxu0 %v291_v18  ;;  %p1054_p7 = pnand %p1053_p6, %p1047_p2 }
  0x47   : > { %910 = vmatprep.subr.bf16.mxu1 %v291_v18  ;;  %317 = vperm.xlu1 %1010, %v303_v19  }
  0x49   : > { %894 = vmatpush3.bf16.msra.mxu0 %v291_v18 }
  0x4a   : > { %914 = vmatpush3.bf16.msra.mxu1 %v291_v18 }
  0x4b   : > { %322 = vperm.xlu1 %1010, %v304_v20  }
  0x4e   : > { %1011 = vset.pattern.permute.xlu0 %v1202_v0 }
  0x4f   : > { %342 = vperm.xlu1 %1010, %v308_v21  }
  0x53   : > { %347 = vperm.xlu1 %1010, %v309_v22  }
  0x56   : > { %337 = vperm.xlu0 %1011, %v307_v23  }
  0x57   : > { %352 = vperm.xlu1 %1010, %v310_v24  }
  0x5a   : > { %367 = vperm.xlu0 %1011, %v313_v25  }
  0x5b   : > { %357 = vperm.xlu1 %1010, %v311_v26  }
  0x5f   : > { %362 = vperm.xlu1 %1010, %v312_v27  }
  0x63   : > { %372 = vperm.xlu1 %1010, %v314_v28  }
  0x9b   : > { %v407_v29 = vpop.trf.xlu0 }
  0x9c   : > { %895 = vmatprep.mubr.msk.bf16.mxu0 %vm415_vm0, %v407_v29 }
  0x9f   : > { %v408_v30 = vpop.trf.xlu0 }
  0xa0   : > { %896 = vmatmul.mubr.msk.bf16.vlgmr.msra.gmra.mxu0 %vm415_vm0, %v408_v30 }
  0xa3   : > { %v409_v31 = vpop.trf.xlu0 }
  0xa4   : > { %899 = vmatprep.mubr.msk.bf16.mxu1 %vm415_vm0, %v409_v31 }
  0xa7   : > { %v410_v32 = vpop.trf.xlu0 }
  0xa8   : > { %900 = vmatmul.mubr.msk.bf16.vlgmr.msra.gmra.mxu1 %vm415_vm0, %v410_v32 }
  0xab   : > { %v411_v33 = vpop.trf.xlu0 }
  0xac   : > { %903 = vmatprep.mubr.msk.bf16.mxu1 %vm415_vm0, %v411_v33 }
  0xaf   : > { %v412_v34 = vpop.trf.xlu0 }
  0xb0   : > { %904 = vmatmul.mubr.msk.bf16.gmra.mxu1 %vm415_vm0, %v412_v34 }
  0xba   : > { %v328_v35 = vpop.permute.xlu1 %327 }
  0xbe   : > { %v333_v36 = vpop.permute.xlu1 %332 }
  0xc2   : > { %v318_v37 = vpop.permute.xlu1 %317 }
  0xc6   : > { %v323_v38 = vpop.permute.xlu1 %322 }
  0xca   : > { %v1399_v39 = vpop.permute.xlu1 %342 }
  0xce   : > { %v1401_v40 = vpop.permute.xlu1 %347 }
  0xd2   : > { %v1406_v42 = vpop.permute.xlu1 %352 }
  0xd6   : > { %v1419_v51 = vpop.permute.xlu1 %357 }
 0x160   : > { %v897_v41 = vpop.f32.mrf.mxu0 }
 0x161   : > { %v477_v45 = vadd.f32 %v897_v41, %v328_v35 }
 0x162   : > { %v468_v43 = vpop.f32.mrf.mxu0 }
 0x163   : > { %v469_v48 = vadd.f32 %v468_v43, %v318_v37 }
 0x164   : > { %v898_v44 = vpop.f32.mrf.mxu0 }
 0x165   : > { %v480_v46 = vadd.f32 %v898_v44, %v333_v36 }
 0x166   : > { %v471_v47 = vpop.f32.mrf.mxu0 }
 0x167   : > { %v852_v49 = vpack.c.bf16 %v480_v46, %v477_v45  ;;  %v472_v50 = vadd.f32 %v471_v47, %v323_v38 }
 0x168   : > { %v901_v52 = vpop.f32.mrf.mxu1 }
 0x169   : > { %853 = vst [vmem:[%s274_s15] sm:$0xff] %v852_v49   ;;  %v847_v53 = vpack.c.bf16 %v472_v50, %v469_v48 }
 0x16a   : > { %v484_v54 = vpop.f32.mrf.mxu1 }
 0x16b   : > { %1057 = shalt.err (!%p1054_p7)
}
 0x16c   : > { %s1058_s15 = scalar_lea.hbm %s1417_s26, 128  ;;  %s1062_s6 = scalar_lea.hbm %s1553_s4, 512 }
 0x16d   : > { %p1059_p10 = scmp.ne.s32.totalorder %s1417_s26, %s1058_s15  ;;  %p1063_p13 = scmp.lt.s32.totalorder %s1417_s26, %s1553_s4 }
 0x16e   : > { %p1064_p1 = scmp.lt.s32.totalorder %s1062_s6, %s1058_s15 }
 0x16f   : > { %p1060_p11 = pnand %p1059_p10, %p1308_p9 }
 0x170   : > { %p1065_p8 = por %p1064_p1, %p1063_p13 }
 0x171   : > { %p1061_p3 = pneg %p1060_p11 }
 0x173   : > { %p1066_p0 = pnand %p1065_p8, %p1061_p3 }
 0x175   : > { %1069 = shalt.err (!%p1066_p0)
}
 0x176   : > { %s1561_s27 = smov 64   ;;  %s1205_s3 = smov 128   ;;  %848 = vst [vmem:[%s1411_s13] sm:$0xff] %v847_v53   ;;  %v338_v55 = vpop.permute.xlu0 %337  ;;  %v902_v56 = vpop.f32.mrf.mxu1 }
 0x177   : > { %s1206_s30 = smov 4   ;;  %s576_s5 = scalar_lea.sflag [#allocation4], %s1343_s7 }
 0x178   : > { %918 = dma.vmem_to_hbm [thread:$0]  (%p1308_p9), %s1409_s16, 128, %s1417_s26, %s1428_s8, %s1561_s27, %s1205_s3, %s1206_s30  }
 0x179   : > { %s1070_s29 = scalar_lea.vmem %s1421_s17, 128  ;;  %s1207_s6 = smov [#allocation5]  }
 0x17a   : > { %p1071_p2 = scmp.ne.s32.totalorder %s1421_s17, %s1070_s29  ;;  %s1074_s10 = sshll.u32 %s1207_s6, 4  ;;  %s1075_s10 = int_to_ptr.vmem [resolvable:$false] %s1074_s10 }
 0x17b   : > { %s1076_s18 = scalar_lea.vmem %s1075_s10, 256  ;;  %p1077_p6 = scmp.lt.s32.totalorder %s1421_s17, %s1075_s10 }
 0x17c   : > { %p1072_p4 = pnand %p1071_p2, %p1308_p9  ;;  %p1078_p7 = scmp.lt.s32.totalorder %s1076_s18, %s1070_s29 }
 0x17e   : > { %p1073_p5 = pneg %p1072_p4  ;;  %p1079_p10 = por %p1078_p7, %p1077_p6 }
 0x180   : > { %p1080_p11 = pnand %p1079_p10, %p1073_p5 }
 0x182   : > { %1083 = shalt.err (!%p1080_p11)
}
 0x183   : > { %s1084_s16 = scalar_lea.hbm %s1426_s28, 128  ;;  %s1088_s6 = scalar_lea.hbm %s1573_s11, 512 }
 0x184   : > { %p1085_p3 = scmp.ne.s32.totalorder %s1426_s28, %s1084_s16  ;;  %p1089_p8 = scmp.lt.s32.totalorder %s1426_s28, %s1573_s11 }
 0x185   : > { %p1090_p0 = scmp.lt.s32.totalorder %s1088_s6, %s1084_s16 }
 0x186   : > { %p1086_p13 = pnand %p1085_p3, %p1308_p9 }
 0x187   : > { %p1091_p2 = por %p1090_p0, %p1089_p8 }
 0x188   : > { %p1087_p1 = pneg %p1086_p13 }
 0x18a   : > { %p1092_p4 = pnand %p1091_p2, %p1087_p1 }
 0x18c   : > { %1095 = shalt.err (!%p1092_p4)
}
 0x18d   : > { %s1574_s29 = smov 64   ;;  %v493_v57 = vadd.f32 %v901_v52, %v1401_v40  ;;  %v496_v58 = vadd.f32 %v902_v56, %v1406_v42  ;;  %v363_v59 = vpop.permute.xlu1 %362  ;;  %v487_v60 = vpop.f32.mrf.mxu1  ;;  %v485_v61 = vadd.f32 %v484_v54, %v338_v55  ;;  %s828_s27 = sshll.u32 %s1184_s22, 4 }
 0x18e   : > { %917 = dma.vmem_to_hbm [thread:$0]  (%p1308_p9), %s1421_s17, 128, %s1426_s28, %s576_s5, %s1574_s29, %s1205_s3, %s1206_s30   ;;  %v488_v63 = vadd.f32 %v487_v60, %v1399_v39  ;;  %v368_v2 = vpop.permute.xlu0 %367 }
 0x18f   : > { %v862_v62 = vpack.c.bf16 %v496_v58, %v493_v57  ;;  %v905_v0 = vpop.f32.mrf.mxu1  ;;  %s1575_s15 = sshll.u32 %s1343_s7, 5  ;;  %s631_s17 = sadd.s32 %s1180_s21, %s828_s27 }
 0x190   : > { %s281_s10 = scalar_lea.vmem [#allocation8], %s1575_s15  ;;  %v857_v1 = vpack.c.bf16 %v488_v63, %v485_v61  ;;  %v509_v6 = vadd.f32 %v905_v0, %v368_v2  ;;  %s829_s5 = sshll.u32 %s631_s17, 6 }
 0x191   : > { %874 = vst [vmem:[%s281_s10 + $0x8] sm:$0xff] %v862_v62   ;;  %v500_v3 = vpop.f32.mrf.mxu1  ;;  %v373_v4 = vpop.permute.xlu1 %372  ;;  %s634_s28 = sshll.u32 %s281_s10, 4  ;;  %s1576_s7 = sld [smem:[#allocation16_spill]]  ;;  %s1488_s28 = int_to_ptr.vmem [resolvable:$true] %s634_s28 }
 0x192   : > { %858 = vst [vmem:[%s281_s10] sm:$0xff] %v857_v1   ;;  %v501_v9 = vadd.f32 %v500_v3, %v1419_v51  ;;  %s1096_s16 = scalar_lea.vmem %s1488_s28, 512  ;;  %s1208_s13 = smov [#allocation8]  }
 0x193   : > { %v906_v5 = vpop.f32.mrf.mxu1  ;;  %p1097_p5 = scmp.ne.s32.totalorder %s1488_s28, %s1096_s16  ;;  %s1100_s26 = sshll.u32 %s1208_s13, 4  ;;  %s1101_s26 = int_to_ptr.vmem [resolvable:$false] %s1100_s26 }
 0x194   : > { %v512_v7 = vadd.f32 %v906_v5, %v373_v4  ;;  %s1102_s6 = scalar_lea.vmem %s1101_s26, 1024  ;;  %p1103_p10 = scmp.lt.s32.totalorder %s1488_s28, %s1101_s26 }
 0x195   : > { %v503_v8 = vpop.f32.mrf.mxu1  ;;  %p1098_p6 = pnand %p1097_p5, %p1308_p9  ;;  %p1104_p11 = scmp.lt.s32.totalorder %s1102_s6, %s1096_s16 }
 0x196   : > { %v872_v10 = vpack.c.bf16 %v512_v7, %v509_v6  ;;  %v504_v11 = vadd.f32 %v503_v8, %v363_v59 }
 0x197   : > { %s1493_s18 = scalar_lea.hbm %s1576_s7, %s829_s5  ;;  %p1099_p7 = pneg %p1098_p6 }
 0x198   : > { %876 = vst [vmem:[%s281_s10 + $0x18] sm:$0xff] %v872_v10   ;;  %v867_v12 = vpack.c.bf16 %v504_v11, %v501_v9  ;;  %p1105_p3 = por %p1104_p11, %p1103_p10 }
 0x19a   : > { %875 = vst [vmem:[%s281_s10 + $0x10] sm:$0xff] %v867_v12   ;;  %p1106_p13 = pnand %p1105_p3, %p1099_p7 }
 0x19c   : > { %1109 = shalt.err (!%p1106_p13)
}
 0x19d   : > { %s1110_s27 = scalar_lea.hbm %s1493_s18, 512  ;;  %s1114_s17 = scalar_lea.hbm %s1576_s7, 2048 }
 0x19e   : > { %p1111_p1 = scmp.ne.s32.totalorder %s1493_s18, %s1110_s27  ;;  %p1115_p2 = scmp.lt.s32.totalorder %s1493_s18, %s1576_s7 }
 0x19f   : > { %p1116_p4 = scmp.lt.s32.totalorder %s1114_s17, %s1110_s27 }
 0x1a0   : > { %p1112_p8 = pnand %p1111_p1, %p1308_p9 }
 0x1a1   : > { %p1117_p5 = por %p1116_p4, %p1115_p2 }
 0x1a2   : > { %p1113_p0 = pneg %p1112_p8 }
 0x1a4   : > { %p1118_p6 = pnand %p1117_p5, %p1113_p0 }
 0x1a6   : > { %1121 = shalt.err (!%p1118_p6)
}
 0x1a7   : > { %919 = dma.vmem_to_hbm [thread:$0]  (%p1308_p9), %s1488_s28, 512, %s1493_s18, %s1428_s8, %s1574_s29, %s1205_s3, %s1206_s30  }
 0x1a8 PF: > { %s1577_s22 = sld [smem:[#allocation12_spill]]  ;;  %p938_p7 = scmp.ge.s32.totalorder %s1196_s25, 2 }
 0x1aa   : > { %p928_p10 = pnand %p938_p7, %p1316_p12 }
 0x1ac   : > { %p929_p11 = pneg %p928_p10 }
 0x1ae   : > { %s649_s16 = sand.u32 1, %s1577_s22  }
 0x1af   : > { %s650_s13 = scalar_lea.sflag [#allocation4], %s649_s16 }
 0x1b0   : > { %1159 = dma.done.wait (%p929_p11), %s650_s13, 128  }
 0x1b1   : > { %1161 = vsyncadd (%p929_p11), %s650_s13, 4294967168  ;;  %s1578_s9 = sadd.s32 4294967294, %s1196_s25  }
 0x1b2   : > { %s658_s26 = sand.u32 1, %s1578_s9  }
 0x1b3   : > { %s659_s6 = scalar_lea.sflag [#allocation7], %s658_s26 }
 0x1b4   : > { %1163 = dma.done.wait (%p929_p11), %s659_s6, 640  }
 0x1b5   : > { %1165 = vsyncadd (%p929_p11), %s659_s6, 4294966656  ;;  %s25_s25 = sadd.s32 1, %s1196_s25   ;;  %s1579_s12 = sld [smem:[#allocation13_spill]] }
 0x1b6   : > { %p22_p9 = scmp.ge.s32.totalorder %s25_s25, 6   ;;  %s1580_s8 = sld [smem:[#allocation14_spill]] }
 0x1b7   : > { %s1581_s18 = smov %s1172_s19  ;;  %s1582_s19 = smov %s1176_s20 }
 0x1b8   : > { %s1583_s20 = smov %s1323_s14  ;;  %s1584_s21 = smov %s1188_s23 }
 0x1b9   : > { %s1585_s22 = smov %s1192_s24  ;;  %24 = sbr.rel (!%p22_p9) target bundleno = 12 (0xc), region = 109 }
 0x1bb   : > { %s1586_s23 = smov %s1579_s12 }
 0x1bc   : > { %s1587_s24 = smov %s1580_s8 }
 0x1be   :  { %673 = vsyncpa [#allocation3], 1 }
 0x1bf   :  { %675 = vsyncpa [#allocation3 + $0x1], 1 }
 0x1c0   :  { %676 = vsyncpa [#allocation4], 1 }
 0x1c1   :  { %678 = vsyncpa [#allocation4 + $0x1], 1 }
 0x1c2   :  { %679 = vsyncpa [#allocation7], 1 }
 0x1c3   :  { %681 = vsyncpa [#allocation7 + $0x1], 1 }

</bundles_post_ra>
